<compile_context>
chip_gen: v5e
topology: v5e:2x2
jax: 0.10.0
libtpu: 0.0.40
codegen_flags: <defaults>
</compile_context>

<pallas_src>
import functools

import jax
import jax.numpy as jnp
from jax.experimental import pallas as pl
from jax.experimental.pallas import tpu as pltpu


def _round_up(x, m):
    return (x + m - 1) // m * m


def _vmem_capacity_bytes():
    try:
        return int(pltpu.get_tpu_info().vmem_capacity_bytes)
    except Exception:
        return 64 * 1024 * 1024  # conservative fallback (v7x per-TC)


def _spec(block_shape, index_map, buffer_count=None):
    """BlockSpec with optional explicit buffering (graceful fallback)."""
    if buffer_count is not None:
        try:
            return pl.BlockSpec(block_shape, index_map,
                                pipeline_mode=pl.Buffered(buffer_count))
        except (TypeError, AttributeError):
            pass
    return pl.BlockSpec(block_shape, index_map)


# --------------------------------------------------------------------------
# Kernels
# --------------------------------------------------------------------------
def _mlp_kernel_resident(x_ref, wa_ref, wg_ref, ba_ref, bg_ref, wp_ref, bp_ref,
                         o_ref):
    """One row-tile of tokens; all weights resident in VMEM (single-buffered)."""
    x = x_ref[...]                                                    # (tm, Dp)
    # MXU dots in the compute dtype, f32 accumulation.
    a = jnp.dot(x, wa_ref[...], preferred_element_type=jnp.float32) + ba_ref[...]
    g = jnp.dot(x, wg_ref[...], preferred_element_type=jnp.float32) + bg_ref[...]
    # SwiGLU: a * silu(g); sigmoid runs on the EUP slot.  (Single fused
    # expression so the compiler can reuse the a/g buffers for s.)
    s = a * (g * jax.nn.sigmoid(g))                                   # (tm, Hp) f32
    y = jnp.dot(s.astype(wp_ref.dtype), wp_ref[...],
                preferred_element_type=jnp.float32) + bp_ref[...]
    # dropout(p=0.0) / eval semantics -> identity
    o_ref[...] = y.astype(o_ref.dtype)


def _mlp_kernel_tiled(x_ref, wa_ref, wg_ref, ba_ref, bg_ref, wp_ref, bp_ref,
                      o_ref, acc_ref):
    """Hidden-axis tiled path for large n_embd: stream weight chunks along the
    hidden axis and accumulate the proj matmul into a (tm, Dp) f32 scratch."""
    j = pl.program_id(1)

    @pl.when(j == 0)
    def _():
        acc_ref[...] = jnp.zeros_like(acc_ref)

    x = x_ref[...]                                                    # (tm, Dp)
    a = jnp.dot(x, wa_ref[...], preferred_element_type=jnp.float32) + ba_ref[...]
    g = jnp.dot(x, wg_ref[...], preferred_element_type=jnp.float32) + bg_ref[...]
    s = a * (g * jax.nn.sigmoid(g))                                   # (tm, th) f32
    acc_ref[...] += jnp.dot(s.astype(wp_ref.dtype), wp_ref[...],
                            preferred_element_type=jnp.float32)

    @pl.when(j == pl.num_programs(1) - 1)
    def _():
        o_ref[...] = (acc_ref[...] + bp_ref[...]).astype(o_ref.dtype)


# --------------------------------------------------------------------------
# One-time parameter preparation (hoisted OUT of the forward path)
# --------------------------------------------------------------------------
def prepare_mlp_params(w_fc, b_fc, w_proj, b_proj, *, compute_dtype=None):
    """Split c_fc into a/gate halves, pad feature axes to multiples of 128 and
    cast to the MXU compute dtype.  Call once at parameter init.

    w_fc: (D, 4D)   (already transposed vs. PyTorch's (out, in))
    b_fc: (4D,) or (1, 4D);  w_proj: (2D, D);  b_proj: (D,) or (1, D)
    """
    D, H = w_fc.shape
    Hh = H // 2
    if compute_dtype is None:
        compute_dtype = w_fc.dtype

    # Normalize PyTorch-style 1-D biases to (1, n) rows.
    b_fc = jnp.reshape(b_fc, (1, H))
    b_proj = jnp.reshape(b_proj, (1, D))

    Dp = _round_up(D, 128)
    Hp = _round_up(Hh, 128)

    w_a, w_gate = w_fc[:, :Hh], w_fc[:, Hh:]
    b_a, b_gate = b_fc[:, :Hh], b_fc[:, Hh:]

    params = dict(
        w_a=jnp.pad(w_a, ((0, Dp - D), (0, Hp - Hh))).astype(compute_dtype),
        w_gate=jnp.pad(w_gate, ((0, Dp - D), (0, Hp - Hh))).astype(compute_dtype),
        w_proj=jnp.pad(w_proj, ((0, Hp - Hh), (0, Dp - D))).astype(compute_dtype),
        b_a=jnp.pad(b_a, ((0, 0), (0, Hp - Hh))).astype(jnp.float32),
        b_gate=jnp.pad(b_gate, ((0, 0), (0, Hp - Hh))).astype(jnp.float32),
        b_proj=jnp.pad(b_proj, ((0, 0), (0, Dp - D))).astype(jnp.float32),
    )
    return jax.tree_util.tree_map(jnp.asarray, params)


# --------------------------------------------------------------------------
# Forward
# --------------------------------------------------------------------------
@functools.partial(jax.jit, static_argnames=("tm",))
def _mlp_forward_jit(x, w_a, w_gate, b_a, b_gate, w_proj, b_proj, *, tm=256):
    B, T, D = x.shape
    Dp, Hp = w_a.shape
    compute_dtype = w_a.dtype
    out_dtype = x.dtype
    M = B * T
    w_item = jnp.dtype(compute_dtype).itemsize

    # Row tile: pad M only when needed; sublane alignment 16 for packed dtypes.
    row_align = 16 if w_item < 4 else 8
    tm_eff = min(tm, _round_up(M, row_align))
    Mp = _round_up(M, tm_eff)

    x2 = x.reshape(M, D)
    if compute_dtype != x.dtype:
        x2 = x2.astype(compute_dtype)
    if Mp != M or Dp != D:
        x2 = jnp.pad(x2, ((0, Mp - M), (0, Dp - D)))

    # ---- VMEM budget: per-generation capacity minus headroom -------------
    budget = _vmem_capacity_bytes() - 8 * 1024 * 1024

    # Resident path footprint (weights single-buffered via Buffered(1)).
    weight_bytes = (2 * Dp * Hp + Hp * Dp) * w_item
    act_bytes = 2 * 2 * tm_eff * Dp * w_item          # x + out tiles, 2 bufs each
    interm_bytes = 3 * tm_eff * Hp * 4                 # a, g, s in f32
    resident_total = weight_bytes + act_bytes + interm_bytes
    use_resident = resident_total <= int(0.9 * budget)

    flops = 6 * M * Dp * Hp                            # fc (2 halves) + proj
    cost = pl.CostEstimate(
        flops=int(flops),
        transcendentals=int(M * Hp),
        bytes_accessed=int((2 * M * Dp + 3 * Dp * Hp + 2 * Hp + Dp) * w_item),
    )

    # TODO(synk): on v7x, weights are duplicated per-TensorCore under
    # dimension_semantics=('parallel',); a VMEM_SHARED / core_map split of the
    # hidden axis across the two cores would halve the resident-weight budget.

    if use_resident:
        vmem_limit = int(min(budget,
                             max(int(resident_total * 1.25), 32 * 1024 * 1024)))
        out = pl.pallas_call(
            _mlp_kernel_resident,
            out_shape=jax.ShapeDtypeStruct((Mp, Dp), out_dtype),
            grid_spec=pltpu.PrefetchScalarGridSpec(
                num_scalar_prefetch=0,
                grid=(Mp // tm_eff,),
                in_specs=[
                    _spec((tm_eff, Dp), lambda i: (i, 0)),            # x row tile
                    _spec((Dp, Hp), lambda i: (0, 0), 1),             # w_a    (resident)
                    _spec((Dp, Hp), lambda i: (0, 0), 1),             # w_gate (resident)
                    _spec((1, Hp), lambda i: (0, 0), 1),              # b_a
                    _spec((1, Hp), lambda i: (0, 0), 1),              # b_gate
                    _spec((Hp, Dp), lambda i: (0, 0), 1),             # w_proj (resident)
                    _spec((1, Dp), lambda i: (0, 0), 1),              # b_proj
                ],
                out_specs=pl.BlockSpec((tm_eff, Dp), lambda i: (i, 0)),
            ),
            compiler_params=pltpu.CompilerParams(
                dimension_semantics=("parallel",),
                vmem_limit_bytes=vmem_limit,
            ),
            cost_estimate=cost,
        )(x2, w_a, w_gate, b_a, b_gate, w_proj, b_proj)
    else:
        # ---- hidden-axis tiled fallback (large n_embd / v7x 64 MiB VMEM) ----
        base = Hp // 128
        candidates = sorted({128 * d for d in range(1, base + 1) if base % d == 0},
                            reverse=True)

        def tiled_bytes(th):
            return (2 * 3 * Dp * th * w_item          # streamed weight chunks, 2 bufs
                    + 2 * 2 * tm_eff * Dp * w_item    # x + out tiles
                    + tm_eff * Dp * 4                 # f32 accumulator scratch
                    + 3 * tm_eff * th * 4)            # a, g, s in f32

        th = candidates[-1]
        for cand in candidates:
            if tiled_bytes(cand) <= int(0.9 * budget):
                th = cand
                break

        vmem_limit = int(min(budget,
                             max(int(tiled_bytes(th) * 1.25), 32 * 1024 * 1024)))
        out = pl.pallas_call(
            _mlp_kernel_tiled,
            out_shape=jax.ShapeDtypeStruct((Mp, Dp), out_dtype),
            grid_spec=pltpu.PrefetchScalarGridSpec(
                num_scalar_prefetch=0,
                grid=(Mp // tm_eff, Hp // th),
                in_specs=[
                    _spec((tm_eff, Dp), lambda i, j: (i, 0)),         # x row tile
                    _spec((Dp, th), lambda i, j: (0, j)),             # w_a chunk
                    _spec((Dp, th), lambda i, j: (0, j)),             # w_gate chunk
                    _spec((1, th), lambda i, j: (0, j)),              # b_a chunk
                    _spec((1, th), lambda i, j: (0, j)),              # b_gate chunk
                    _spec((th, Dp), lambda i, j: (j, 0)),             # w_proj chunk
                    _spec((1, Dp), lambda i, j: (0, 0), 1),           # b_proj (resident)
                ],
                out_specs=pl.BlockSpec((tm_eff, Dp), lambda i, j: (i, 0)),
                scratch_shapes=[pltpu.VMEM((tm_eff, Dp), jnp.float32)],
            ),
            compiler_params=pltpu.CompilerParams(
                dimension_semantics=("parallel", "arbitrary"),
                vmem_limit_bytes=vmem_limit,
            ),
            cost_estimate=cost,
        )(x2, w_a, w_gate, b_a, b_gate, w_proj, b_proj)

    if Mp != M or Dp != D:
        out = out[:M, :D]
    return out.reshape(B, T, D)


def mlp_forward(x, params, *, tm=256):
    """x: (B, T, n_embd); params: output of prepare_mlp_params()."""
    return _mlp_forward_jit(x, params["w_a"], params["w_gate"], params["b_a"],
                            params["b_gate"], params["w_proj"], params["b_proj"],
                            tm=tm)


# --------------------------------------------------------------------------
# Reference + test
# --------------------------------------------------------------------------
def reference_mlp(x, w_fc, b_fc, w_proj, b_proj):
    h = jnp.einsum("btd,dh->bth", x.astype(jnp.float32),
                   w_fc.astype(jnp.float32)) + jnp.reshape(b_fc, (1, -1))
    a, gate = jnp.split(h, 2, axis=-1)
    s = a * (gate * jax.nn.sigmoid(gate))
    y = jnp.einsum("bth,hd->btd", s,
                   w_proj.astype(jnp.float32)) + jnp.reshape(b_proj, (1, -1))
    return y.astype(x.dtype)


if __name__ == "__main__":
    # Small config consistent with the module: n_embd=32, bias=True, dropout=0.0
    B, T, n_embd = 2, 8, 32
    hidden = 4 * n_embd          # 128
    half = hidden // 2           # 64

    key = jax.random.PRNGKey(0)
    k_x, k_wfc, k_bfc, k_wp, k_bp = jax.random.split(key, 5)

    x = jax.random.normal(k_x, (B, T, n_embd), dtype=jnp.float32)
    # PyTorch nn.Linear weights are (out, in); store transposed (in, out).
    w_fc = jax.random.normal(k_wfc, (n_embd, hidden), dtype=jnp.float32) * 0.02
    b_fc = jax.random.normal(k_bfc, (hidden,), dtype=jnp.float32) * 0.02
    w_proj = jax.random.normal(k_wp, (half, n_embd), dtype=jnp.float32) * 0.02
    b_proj = jax.random.normal(k_bp, (n_embd,), dtype=jnp.float32) * 0.02

    # One-time weight prep, hoisted out of the forward path.
    params = prepare_mlp_params(w_fc, b_fc, w_proj, b_proj)
    # bf16-MXU opt-in (not exercised here to keep the f32 tolerance check):
    #   params = prepare_mlp_params(w_fc, b_fc, w_proj, b_proj,
    #                               compute_dtype=jnp.bfloat16)

    # TODO(synk): dropout with p>0 (training mode) would need pltpu.prng_* masking;
    # here p=0.0 / eval semantics -> identity.

    y = mlp_forward(x, params)
    jax.block_until_ready(y)

    y_ref = reference_mlp(x, w_fc, b_fc, w_proj, b_proj)
    assert y.shape == (B, T, n_embd)
    assert jnp.allclose(y, y_ref, atol=1e-5, rtol=1e-5), "mismatch vs reference"

    print("KERNEL_OK")
</pallas_src>

<mosaic_0001>
module attributes {stable_mosaic.version = 11 : i64} {
  func.func @_mlp_kernel_resident(%arg0: i32, %arg1: memref<16x128xf32, #tpu.memory_space<vmem>>, %arg2: memref<128x128xf32, #tpu.memory_space<vmem>>, %arg3: memref<128x128xf32, #tpu.memory_space<vmem>>, %arg4: memref<1x128xf32, #tpu.memory_space<vmem>>, %arg5: memref<1x128xf32, #tpu.memory_space<vmem>>, %arg6: memref<128x128xf32, #tpu.memory_space<vmem>>, %arg7: memref<1x128xf32, #tpu.memory_space<vmem>>, %arg8: memref<16x128xf32, #tpu.memory_space<vmem>>) attributes {dimension_semantics = [#tpu.dimension_semantics<parallel>], iteration_bounds = array<i64: 1>, scalar_prefetch = 0 : i64, scratch_operands = 0 : i64, tpu.core_type = #tpu.core_type<tc>, window_params = [{transform_indices = @transform_0, window_bounds = array<i64: 16, 128>}, {pipeline_mode = #tpu.pipeline_mode<synchronous>, transform_indices = @transform_1, window_bounds = array<i64: 128, 128>}, {pipeline_mode = #tpu.pipeline_mode<synchronous>, transform_indices = @transform_2, window_bounds = array<i64: 128, 128>}, {pipeline_mode = #tpu.pipeline_mode<synchronous>, transform_indices = @transform_3, window_bounds = array<i64: 1, 128>}, {pipeline_mode = #tpu.pipeline_mode<synchronous>, transform_indices = @transform_4, window_bounds = array<i64: 1, 128>}, {pipeline_mode = #tpu.pipeline_mode<synchronous>, transform_indices = @transform_5, window_bounds = array<i64: 128, 128>}, {pipeline_mode = #tpu.pipeline_mode<synchronous>, transform_indices = @transform_6, window_bounds = array<i64: 1, 128>}, {transform_indices = @transform_7, window_bounds = array<i64: 16, 128>}]} {
    %c0 = arith.constant 0 : index
    %c0_0 = arith.constant 0 : index
    %0 = vector.load %arg1[%c0, %c0_0] : memref<16x128xf32, #tpu.memory_space<vmem>>, vector<16x128xf32>
    %c0_1 = arith.constant 0 : index
    %c0_2 = arith.constant 0 : index
    %1 = vector.load %arg2[%c0_1, %c0_2] : memref<128x128xf32, #tpu.memory_space<vmem>>, vector<128x128xf32>
    %cst = arith.constant dense<0.000000e+00> : vector<16x128xf32>
    %2 = tpu.matmul %0, %1, %cst {dimension_numbers = #tpu.dot_dimension_numbers<[1], [0], [0], [1], [0, 0, 1, 1], [], []>} : vector<16x128xf32>, vector<128x128xf32>, vector<16x128xf32> -> vector<16x128xf32>
    %c0_3 = arith.constant 0 : index
    %c0_4 = arith.constant 0 : index
    %3 = vector.load %arg4[%c0_3, %c0_4] : memref<1x128xf32, #tpu.memory_space<vmem>>, vector<1x128xf32>
    %4 = vector.broadcast %3 : vector<1x128xf32> to vector<16x128xf32>
    %5 = arith.addf %2, %4 : vector<16x128xf32>
    %c0_5 = arith.constant 0 : index
    %c0_6 = arith.constant 0 : index
    %6 = vector.load %arg3[%c0_5, %c0_6] : memref<128x128xf32, #tpu.memory_space<vmem>>, vector<128x128xf32>
    %cst_7 = arith.constant dense<0.000000e+00> : vector<16x128xf32>
    %7 = tpu.matmul %0, %6, %cst_7 {dimension_numbers = #tpu.dot_dimension_numbers<[1], [0], [0], [1], [0, 0, 1, 1], [], []>} : vector<16x128xf32>, vector<128x128xf32>, vector<16x128xf32> -> vector<16x128xf32>
    %c0_8 = arith.constant 0 : index
    %c0_9 = arith.constant 0 : index
    %8 = vector.load %arg5[%c0_8, %c0_9] : memref<1x128xf32, #tpu.memory_space<vmem>>, vector<1x128xf32>
    %9 = vector.broadcast %8 : vector<1x128xf32> to vector<16x128xf32>
    %10 = arith.addf %7, %9 : vector<16x128xf32>
    %11 = arith.negf %10 : vector<16x128xf32>
    %12 = math.exp %11 : vector<16x128xf32>
    %cst_10 = arith.constant 1.000000e+00 : f32
    %13 = vector.broadcast %cst_10 : f32 to vector<16x128xf32>
    %14 = arith.addf %13, %12 : vector<16x128xf32>
    %15 = arith.divf %13, %14 : vector<16x128xf32>
    %16 = arith.mulf %10, %15 : vector<16x128xf32>
    %17 = arith.mulf %5, %16 : vector<16x128xf32>
    %c0_11 = arith.constant 0 : index
    %c0_12 = arith.constant 0 : index
    %18 = vector.load %arg6[%c0_11, %c0_12] : memref<128x128xf32, #tpu.memory_space<vmem>>, vector<128x128xf32>
    %cst_13 = arith.constant dense<0.000000e+00> : vector<16x128xf32>
    %19 = tpu.matmul %17, %18, %cst_13 {dimension_numbers = #tpu.dot_dimension_numbers<[1], [0], [0], [1], [0, 0, 1, 1], [], []>} : vector<16x128xf32>, vector<128x128xf32>, vector<16x128xf32> -> vector<16x128xf32>
    %c0_14 = arith.constant 0 : index
    %c0_15 = arith.constant 0 : index
    %20 = vector.load %arg7[%c0_14, %c0_15] : memref<1x128xf32, #tpu.memory_space<vmem>>, vector<1x128xf32>
    %21 = vector.broadcast %20 : vector<1x128xf32> to vector<16x128xf32>
    %22 = arith.addf %19, %21 : vector<16x128xf32>
    %c0_16 = arith.constant 0 : index
    %c0_17 = arith.constant 0 : index
    %23 = vector.load %arg8[%c0_16, %c0_17] : memref<16x128xf32, #tpu.memory_space<vmem>>, vector<16x128xf32>
    tpu.vector_store %arg8[%c0_16, %c0_17], %22 {strides = array<i32>} : memref<16x128xf32, #tpu.memory_space<vmem>>, vector<16x128xf32>,
    return
  }
  func.func @transform_0(%arg0: i32) -> (i32, i32) {
    %c0_i32 = arith.constant 0 : i32
    %c0_i32_0 = arith.constant 0 : i32
    return %arg0, %c0_i32 : i32, i32
  }
  func.func @transform_1(%arg0: i32) -> (i32, i32) {
    %c0_i32 = arith.constant 0 : i32
    %c0_i32_0 = arith.constant 0 : i32
    %c0_i32_1 = arith.constant 0 : i32
    return %c0_i32, %c0_i32_0 : i32, i32
  }
  func.func @transform_2(%arg0: i32) -> (i32, i32) {
    %c0_i32 = arith.constant 0 : i32
    %c0_i32_0 = arith.constant 0 : i32
    %c0_i32_1 = arith.constant 0 : i32
    return %c0_i32, %c0_i32_0 : i32, i32
  }
  func.func @transform_3(%arg0: i32) -> (i32, i32) {
    %c0_i32 = arith.constant 0 : i32
    %c0_i32_0 = arith.constant 0 : i32
    %c0_i32_1 = arith.constant 0 : i32
    return %c0_i32, %c0_i32_0 : i32, i32
  }
  func.func @transform_4(%arg0: i32) -> (i32, i32) {
    %c0_i32 = arith.constant 0 : i32
    %c0_i32_0 = arith.constant 0 : i32
    %c0_i32_1 = arith.constant 0 : i32
    return %c0_i32, %c0_i32_0 : i32, i32
  }
  func.func @transform_5(%arg0: i32) -> (i32, i32) {
    %c0_i32 = arith.constant 0 : i32
    %c0_i32_0 = arith.constant 0 : i32
    %c0_i32_1 = arith.constant 0 : i32
    return %c0_i32, %c0_i32_0 : i32, i32
  }
  func.func @transform_6(%arg0: i32) -> (i32, i32) {
    %c0_i32 = arith.constant 0 : i32
    %c0_i32_0 = arith.constant 0 : i32
    %c0_i32_1 = arith.constant 0 : i32
    return %c0_i32, %c0_i32_0 : i32, i32
  }
  func.func @transform_7(%arg0: i32) -> (i32, i32) {
    %c0_i32 = arith.constant 0 : i32
    %c0_i32_0 = arith.constant 0 : i32
    return %arg0, %c0_i32 : i32, i32
  }
}

</mosaic_0001>

<bundles_post_ra>
// kernel: _mlp_forward_jit.1
= control target key start
LH: loop header
LB: loop body
LE: loop exit
PB: predicated region body
PF: predicated region fallthrough
CT: control target
= control target key end

     0   :  { %12 = vsyncpa [#allocation3], 0  ;;  %s439_s0 = inlined_call_operand.vmem [shape: f32[16,128], index: 0, kind: input, shape index: {}]   ;;  %s440_s1 = inlined_call_operand.hbm [shape: f32[128,128], index: 1, kind: input, shape index: {}]   ;;  %s441_s2 = inlined_call_operand.hbm [shape: f32[128,128], index: 2, kind: input, shape index: {}]   ;;  %s442_s3 = inlined_call_operand.vmem [shape: f32[1,128], index: 3, kind: input, shape index: {}]   ;;  %s443_s4 = inlined_call_operand.vmem [shape: f32[1,128], index: 4, kind: input, shape index: {}]   ;;  %s444_s5 = inlined_call_operand.hbm [shape: f32[128,128], index: 5, kind: input, shape index: {}]   ;;  %s445_s6 = inlined_call_operand.vmem [shape: f32[1,128], index: 6, kind: input, shape index: {}]   ;;  %s446_s7 = inlined_call_operand.vmem [shape: f32[16,128], index: 7, kind: output, shape index: {}]  }
   0x1   :  { %13 = vsyncpa [#allocation5], 0  ;;  %s33_s26 = sshll.u32 %s441_s2, 4  ;;  %s364_s27 = smov [#allocation4]   ;;  %s34_s26 = int_to_ptr.hbm [resolvable:$true] %s33_s26 }
   0x2   :  { %s35_s28 = sshll.u32 %s364_s27, 4  ;;  %s20_s8 = sshll.u32 %s440_s1, 4  ;;  %s36_s28 = int_to_ptr.vmem [resolvable:$true] %s35_s28  ;;  %s21_s8 = int_to_ptr.hbm [resolvable:$true] %s20_s8 }
   0x3   :  { %s365_s9 = smov 128   ;;  %s366_s10 = smov 8  }
   0x4   :  { %41 = dma.hbm_to_vmem [thread:$0]  %s34_s26, 2048, %s36_s28, [#allocation5], %s365_s9, %s365_s9, %s366_s10  }
   0x5   :  { %s367_s11 = smov [#allocation2]   ;;  %s50_s15 = sshll.u32 %s444_s5, 4  ;;  %s51_s15 = int_to_ptr.hbm [resolvable:$true] %s50_s15 }
   0x6   :  { %s22_s12 = sshll.u32 %s367_s11, 4  ;;  %s368_s2 = smov [#allocation6]   ;;  %s23_s12 = int_to_ptr.vmem [resolvable:$true] %s22_s12 }
   0x7   :  { %28 = dma.hbm_to_vmem [thread:$0]  %s21_s8, 2048, %s23_s12, [#allocation3], %s365_s9, %s365_s9, %s366_s10  }
   0x8   :  { %s52_s16 = sshll.u32 %s368_s2, 4  ;;  %s53_s16 = int_to_ptr.vmem [resolvable:$true] %s52_s16 }
   0x9   :  { %58 = dma.hbm_to_vmem [thread:$0]  %s51_s15, 2048, %s53_s16, [#allocation5], %s365_s9, %s365_s9, %s366_s10  }
   0xa   :  { %360 = dma.done.wait [#allocation3], 2048  }
   0xb   :  { %361 = vsyncadd [#allocation3], 4294965248 }
   0xc   :  { %362 = dma.done.wait [#allocation5], 4096  }
   0xd   :  { %363 = vsyncadd [#allocation5], 4294963200  ;;  %v133_v0 = vld [vmem:[#allocation4 + $0x78] sm:$0xff]  ;;  %v132_v1 = vld [vmem:[#allocation4 + $0x70] sm:$0xff] }
   0xe   :  { %138 = vmatpush.msra.mxu1 %v133_v0  ;;  %v131_v2 = vld [vmem:[#allocation4 + $0x68] sm:$0xff]  ;;  %v130_v3 = vld [vmem:[#allocation4 + $0x60] sm:$0xff]  ;;  %v90_v4 = vld [vmem:[#allocation2 + $0x78] sm:$0xff] }
   0xf   :  { %v129_v5 = vld [vmem:[#allocation4 + $0x58] sm:$0xff]  ;;  %95 = vmatpush.msra.mxu0 %v90_v4  ;;  %256 = vmatpush.msra.mxu3 %v90_v4  ;;  %v89_v6 = vld [vmem:[#allocation2 + $0x70] sm:$0xff]  ;;  %v88_v7 = vld [vmem:[#allocation2 + $0x68] sm:$0xff] }
  0x10   :  { %139 = vmatpush.msra.mxu1 %v132_v1  ;;  %v128_v8 = vld [vmem:[#allocation4 + $0x50] sm:$0xff]  ;;  %v87_v9 = vld [vmem:[#allocation2 + $0x60] sm:$0xff]  ;;  %v127_v10 = vld [vmem:[#allocation4 + $0x48] sm:$0xff] }
  0x11   :  { %96 = vmatpush.msra.mxu0 %v89_v6  ;;  %257 = vmatpush.msra.mxu3 %v89_v6  ;;  %v86_v11 = vld [vmem:[#allocation2 + $0x58] sm:$0xff]  ;;  %v126_v12 = vld [vmem:[#allocation4 + $0x40] sm:$0xff]  ;;  %v85_v13 = vld [vmem:[#allocation2 + $0x50] sm:$0xff] }
  0x12   :  { %140 = vmatpush.msra.mxu1 %v131_v2  ;;  %v125_v14 = vld [vmem:[#allocation4 + $0x38] sm:$0xff]  ;;  %v84_v15 = vld [vmem:[#allocation2 + $0x48] sm:$0xff]  ;;  %v124_v16 = vld [vmem:[#allocation4 + $0x30] sm:$0xff] }
  0x13   :  { %97 = vmatpush.msra.mxu0 %v88_v7  ;;  %258 = vmatpush.msra.mxu3 %v88_v7  ;;  %v83_v17 = vld [vmem:[#allocation2 + $0x40] sm:$0xff]  ;;  %v123_v18 = vld [vmem:[#allocation4 + $0x28] sm:$0xff]  ;;  %v82_v19 = vld [vmem:[#allocation2 + $0x38] sm:$0xff] }
  0x14   :  { %141 = vmatpush.msra.mxu1 %v130_v3  ;;  %v122_v20 = vld [vmem:[#allocation4 + $0x20] sm:$0xff]  ;;  %v81_v21 = vld [vmem:[#allocation2 + $0x30] sm:$0xff]  ;;  %v121_v22 = vld [vmem:[#allocation4 + $0x18] sm:$0xff] }
  0x15   :  { %98 = vmatpush.msra.mxu0 %v87_v9  ;;  %259 = vmatpush.msra.mxu3 %v87_v9  ;;  %v80_v23 = vld [vmem:[#allocation2 + $0x28] sm:$0xff]  ;;  %v120_v24 = vld [vmem:[#allocation4 + $0x10] sm:$0xff]  ;;  %v79_v25 = vld [vmem:[#allocation2 + $0x20] sm:$0xff] }
  0x16   :  { %142 = vmatpush.msra.mxu1 %v129_v5  ;;  %v119_v26 = vld [vmem:[#allocation4 + $0x8] sm:$0xff]  ;;  %v78_v27 = vld [vmem:[#allocation2 + $0x18] sm:$0xff]  ;;  %v118_v28 = vld [vmem:[#allocation4] sm:$0xff] }
  0x17   :  { %99 = vmatpush.msra.mxu0 %v86_v11  ;;  %260 = vmatpush.msra.mxu3 %v86_v11  ;;  %v73_v29 = vld [vmem:[%s439_s0] sm:$0xff]  ;;  %v77_v30 = vld [vmem:[#allocation2 + $0x10] sm:$0xff]  ;;  %v76_v31 = vld [vmem:[#allocation2 + $0x8] sm:$0xff] }
  0x18   :  { %143 = vmatpush.msra.mxu1 %v128_v8  ;;  %v75_v32 = vld [vmem:[#allocation2] sm:$0xff]  ;;  %v74_v33 = vld [vmem:[%s439_s0 + $0x8] sm:$0xff]  ;;  %v218_v34 = vld [vmem:[#allocation6 + $0x78] sm:$0xff] }
  0x19   :  { %100 = vmatpush.msra.mxu0 %v85_v13  ;;  %261 = vmatpush.msra.mxu3 %v85_v13  ;;  %v217_v35 = vld [vmem:[#allocation6 + $0x70] sm:$0xff]  ;;  %v216_v36 = vld [vmem:[#allocation6 + $0x68] sm:$0xff]  ;;  %v215_v37 = vld [vmem:[#allocation6 + $0x60] sm:$0xff] }
  0x1a   :  { %144 = vmatpush.msra.mxu1 %v127_v10  ;;  %223 = vmatpush.msra.mxu2 %v218_v34  ;;  %v214_v38 = vld [vmem:[#allocation6 + $0x58] sm:$0xff]  ;;  %v213_v39 = vld [vmem:[#allocation6 + $0x50] sm:$0xff]  ;;  %v212_v40 = vld [vmem:[#allocation6 + $0x48] sm:$0xff] }
  0x1b   :  { %101 = vmatpush.msra.mxu0 %v84_v15  ;;  %262 = vmatpush.msra.mxu3 %v84_v15  ;;  %v211_v41 = vld [vmem:[#allocation6 + $0x40] sm:$0xff]  ;;  %v210_v42 = vld [vmem:[#allocation6 + $0x38] sm:$0xff]  ;;  %v209_v43 = vld [vmem:[#allocation6 + $0x30] sm:$0xff] }
  0x1c   :  { %145 = vmatpush.msra.mxu1 %v126_v12  ;;  %224 = vmatpush.msra.mxu2 %v217_v35  ;;  %v208_v44 = vld [vmem:[#allocation6 + $0x28] sm:$0xff]  ;;  %v207_v45 = vld [vmem:[#allocation6 + $0x20] sm:$0xff]  ;;  %v206_v46 = vld [vmem:[#allocation6 + $0x18] sm:$0xff] }
  0x1d   :  { %102 = vmatpush.msra.mxu0 %v83_v17  ;;  %263 = vmatpush.msra.mxu3 %v83_v17  ;;  %v277_v47 = vld [vmem:[%s443_s4] ss:$0 sm:$0xff]  ;;  %v205_v48 = vld [vmem:[#allocation6 + $0x10] sm:$0xff]  ;;  %v204_v49 = vld [vmem:[#allocation6 + $0x8] sm:$0xff] }
  0x1e   :  { %146 = vmatpush.msra.mxu1 %v125_v14  ;;  %225 = vmatpush.msra.mxu2 %v216_v36  ;;  %v203_v52 = vld [vmem:[#allocation6] sm:$0xff] }
  0x1f   :  { %103 = vmatpush.msra.mxu0 %v82_v19  ;;  %264 = vmatpush.msra.mxu3 %v82_v19  ;;  %v278_v3 = vld [vmem:[%s442_s3] ss:$0 sm:$0xff] }
  0x20   :  { %147 = vmatpush.msra.mxu1 %v124_v16  ;;  %226 = vmatpush.msra.mxu2 %v215_v37 }
  0x21   :  { %104 = vmatpush.msra.mxu0 %v81_v21  ;;  %265 = vmatpush.msra.mxu3 %v81_v21 }
  0x22   :  { %148 = vmatpush.msra.mxu1 %v123_v18  ;;  %227 = vmatpush.msra.mxu2 %v214_v38 }
  0x23   :  { %105 = vmatpush.msra.mxu0 %v80_v23  ;;  %266 = vmatpush.msra.mxu3 %v80_v23 }
  0x24   :  { %149 = vmatpush.msra.mxu1 %v122_v20  ;;  %228 = vmatpush.msra.mxu2 %v213_v39 }
  0x25   :  { %106 = vmatpush.msra.mxu0 %v79_v25  ;;  %267 = vmatpush.msra.mxu3 %v79_v25 }
  0x26   :  { %150 = vmatpush.msra.mxu1 %v121_v22  ;;  %229 = vmatpush.msra.mxu2 %v212_v40 }
  0x27   :  { %107 = vmatpush.msra.mxu0 %v78_v27  ;;  %268 = vmatpush.msra.mxu3 %v78_v27 }
  0x28   :  { %151 = vmatpush.msra.mxu1 %v120_v24  ;;  %230 = vmatpush.msra.mxu2 %v211_v41 }
  0x29   :  { %108 = vmatpush.msra.mxu0 %v77_v30  ;;  %269 = vmatpush.msra.mxu3 %v77_v30 }
  0x2a   :  { %152 = vmatpush.msra.mxu1 %v119_v26  ;;  %231 = vmatpush.msra.mxu2 %v210_v42  ;;  %v279_v26 = vld [vmem:[%s445_s6] ss:$0 sm:$0xff] }
  0x2b   :  { %109 = vmatpush.msra.mxu0 %v76_v31  ;;  %270 = vmatpush.msra.mxu3 %v76_v31 }
  0x2c   :  { %153 = vmatpush.msra.mxu1 %v118_v28  ;;  %232 = vmatpush.msra.mxu2 %v209_v43 }
  0x2d   :  { %154 = vmatmul.f32.vlgmr.msra.gmra.mxu1 %v73_v29  ;;  %110 = vmatpush.msra.mxu0 %v75_v32 }
  0x2e   :  { %111 = vmatmul.f32.vlgmr.msra.gmra.mxu0 %v73_v29  ;;  %271 = vmatpush.msra.mxu3 %v75_v32 }
  0x2f   :  { %114 = vmatmul.f32.vlgmr.msra.gmra.mxu3 %v74_v33  ;;  %233 = vmatpush.msra.mxu2 %v208_v44 }
  0x31   :  { %234 = vmatpush.msra.mxu2 %v207_v45 }
  0x33   :  { %235 = vmatpush.msra.mxu2 %v206_v46 }
  0x35   :  { %157 = vmatmul.f32.gmra.mxu1 %v74_v33  ;;  %236 = vmatpush.msra.mxu2 %v205_v48 }
  0x37   :  { %237 = vmatpush.msra.mxu2 %v204_v49 }
  0x39   :  { %238 = vmatpush.msra.mxu2 %v203_v52 }
  0xaa   :  { %v155_v50 = vpop.f32.mrf.mxu1 }
  0xab   :  { %v156_v51 = vadd.f32 %v277_v47, %v155_v50  ;;  %v112_v4 = vpop.f32.mrf.mxu0 }
  0xac   :  { %v113_v10 = vadd.f32 %v278_v3, %v112_v4 }
  0xad   :  { %v254_v53 = vmul.f32 -1.442695, %v156_v51 }
  0xaf   :  { %280 = vpow2.f32 %v254_v53 }
  0xb2   :  { %v158_v54 = vpop.f32.mrf.mxu1  ;;  %v115_v18 = vpop.f32.mrf.mxu3 }
  0xb3   :  { %v159_v55 = vadd.f32 %v277_v47, %v158_v54  ;;  %v116_v22 = vadd.f32 %v278_v3, %v115_v18 }
  0xb5   :  { %v281_v56 = vpop.eup %280  ;;  %v255_v57 = vmul.f32 -1.442695, %v159_v55 }
  0xb6   :  { %v167_v58 = vadd.f32 1.0, %v281_v56 }
  0xb7   :  { %282 = vpow2.f32 %v255_v57 }
  0xb8   :  { %284 = vrcp.f32 %v167_v58  ;;  %v180_v0 = vand.u32 2147483648, %v167_v58  ;;  %v178_v2 = vand.u32 2147483647, %v167_v58  ;;  %vm174_vm1 = vweird.f32 %v167_v58 }
  0xba   :  { %v181_v7 = vor.u32 1.1754944e-38, %v180_v0  ;;  %vm179_vm3 = vcmp.eq.f32.partialorder %v178_v2, 8.507059e+37 }
  0xbd   :  { %v283_v59 = vpop.eup %282 }
  0xbe   :  { %v285_v60 = vpop.eup %284  ;;  %v168_v61 = vadd.f32 1.0, %v283_v59 }
  0xbf   :  { %v170_v62 = vmul.f32 %v285_v60, %v167_v58  ;;  %vm175_vm0 = vweird.f32 %v285_v60 }
  0xc0   :  { %286 = vrcp.f32 %v168_v61  ;;  %vm176_vm2 = vmor %vm174_vm1, %vm175_vm0  ;;  %v195_v14 = vand.u32 2147483648, %v168_v61  ;;  %v193_v16 = vand.u32 2147483647, %v168_v61  ;;  %vm189_vm5 = vweird.f32 %v168_v61 }
  0xc1   :  { %v171_v63 = vsub.f32 1.0, %v170_v62 }
  0xc2   :  { %v196_v20 = vor.u32 1.1754944e-38, %v195_v14  ;;  %vm194_vm7 = vcmp.eq.f32.partialorder %v193_v16, 8.507059e+37 }
  0xc3   :  { %v172_v1 = vmul.f32 %v285_v60, %v171_v63 }
  0xc5   :  { %v173_v5 = vadd.f32 %v285_v60, %v172_v1 }
  0xc6   :  { %v287_v6 = vpop.eup %286 }
  0xc7   :  { %v177_v8 = vsel %vm176_vm2, %v285_v60, %v173_v5  ;;  %v185_v9 = vmul.f32 %v287_v6, %v168_v61  ;;  %vm190_vm4 = vweird.f32 %v287_v6 }
  0xc8   :  { %v182_v11 = vsel %vm179_vm3, %v181_v7, %v177_v8  ;;  %vm191_vm6 = vmor %vm189_vm5, %vm190_vm4 }
  0xc9   :  { %v199_v12 = vmul.f32 %v182_v11, %v156_v51  ;;  %v186_v13 = vsub.f32 1.0, %v185_v9 }
  0xcb   :  { %v187_v15 = vmul.f32 %v287_v6, %v186_v13  ;;  %v201_v17 = vmul.f32 %v199_v12, %v113_v10 }
  0xcd   :  { %v188_v19 = vadd.f32 %v287_v6, %v187_v15  ;;  %239 = vmatmul.f32.vlgmr.msra.gmra.mxu2 %v201_v17 }
  0xcf   :  { %v192_v21 = vsel %vm191_vm6, %v287_v6, %v188_v19 }
  0xd0   :  { %v197_v23 = vsel %vm194_vm7, %v196_v20, %v192_v21 }
  0xd1   :  { %v200_v24 = vmul.f32 %v197_v23, %v159_v55 }
  0xd3   :  { %v202_v25 = vmul.f32 %v200_v24, %v116_v22 }
  0xd5   :  { %242 = vmatmul.f32.gmra.mxu2 %v202_v25 }
 0x150   :  { %v240_v27 = vpop.f32.mrf.mxu2 }
 0x151   :  { %v241_v28 = vadd.f32 %v279_v26, %v240_v27 }
 0x153   :  { %246 = vst [vmem:[%s446_s7] sm:$0xff] %v241_v28 }
 0x158   :  { %v243_v29 = vpop.f32.mrf.mxu2 }
 0x159   :  { %v244_v30 = vadd.f32 %v279_v26, %v243_v29 }
 0x15b   :  { %247 = vst [vmem:[%s446_s7 + $0x8] sm:$0xff] %v244_v30 }
 0x15c   :  { %252 = vsyncpa [#allocation3], 1 }
 0x15d   :  { %253 = vsyncpa [#allocation5], 1 }

</bundles_post_ra>
